<compile_context>
chip_gen: v7x
topology: tpu7x:2x2x1
jax: 0.10.0
libtpu: 0.0.40
codegen_flags: <defaults>
</compile_context>

<pallas_src>
import functools

import jax
import jax.numpy as jnp
from jax.experimental import pallas as pl
from jax.experimental.pallas import tpu as pltpu


def _linear_mse_kernel(xy_ref, wb_ref, out_ref, *, din, dout):
    # Single VMEM tile; whole hot path (FMA linear + bias + squared-error
    # reduction) runs inside the kernel on the VPU/XLU only.
    xy = xy_ref[...]                 # (B, din + dout) f32
    wb = wb_ref[...]                 # (din + 1, dout) f32: rows 0..din-1 = W^T, row din = bias

    x = xy[:, :din]                  # (B, din)
    y = xy[:, din:]                  # (B, dout)
    batch = x.shape[0]

    # nn.Linear: y_pred = x @ W^T + b, computed as `din` broadcast FMAs
    # (no MXU round-trip, no XLU transpose).
    y_pred = jnp.broadcast_to(wb[din:din + 1, :], (batch, dout))
    for k in range(din):
        y_pred = y_pred + x[:, k:k + 1] * wb[k:k + 1, :]

    # y.detach_() only affects autograd; forward value is unchanged.
    diff = y_pred - y
    inv_n = jnp.float32(1.0 / float(batch * dout))   # static constant multiply, no divide
    out_ref[0, 0] = jnp.sum(diff * diff) * inv_n


def linear_mse_loss(x, w, b, y):
    """x: (B, Din), w: (Dout, Din) [PyTorch nn.Linear layout], b: (Dout,), y: (B, Dout) -> scalar f32."""
    batch, din = x.shape
    dout = w.shape[0]

    # Consolidate four tiny HBM->VMEM DMAs into two (trace-time, free in XLA):
    xy = jnp.concatenate(
        [x.astype(jnp.float32), y.astype(jnp.float32)], axis=1
    )                                                        # (B, Din + Dout)
    wb = jnp.concatenate(
        [w.T.astype(jnp.float32), b.reshape(1, -1).astype(jnp.float32)], axis=0
    )                                                        # (Din + 1, Dout)

    kernel = functools.partial(_linear_mse_kernel, din=din, dout=dout)
    out = pl.pallas_call(
        kernel,
        out_shape=jax.ShapeDtypeStruct((1, 1), jnp.float32),
        in_specs=[
            pl.BlockSpec(memory_space=pltpu.MemorySpace.VMEM),
            pl.BlockSpec(memory_space=pltpu.MemorySpace.VMEM),
        ],
        out_specs=pl.BlockSpec(memory_space=pltpu.MemorySpace.SMEM),
    )(xy, wb)
    return out[0, 0]


if __name__ == "__main__":
    key = jax.random.PRNGKey(0)
    kx, ky, kw, kb = jax.random.split(key, 4)

    B, DIN, DOUT = 8, 4, 4

    # Inputs
    x = jax.random.normal(kx, (B, DIN), dtype=jnp.float32)
    y = jax.random.normal(ky, (B, DOUT), dtype=jnp.float32)

    # Deterministic nn.Linear(4, 4) parameters (PyTorch-style uniform init bounds)
    bound = 1.0 / jnp.sqrt(jnp.float32(DIN))
    w = jax.random.uniform(kw, (DOUT, DIN), jnp.float32, -bound, bound)
    bias = jax.random.uniform(kb, (DOUT,), jnp.float32, -bound, bound)

    loss = jax.jit(linear_mse_loss)(x, w, bias, y)
    jax.block_until_ready(loss)

    # Pure-JAX reference check
    ref = jnp.mean((x @ w.T + bias - y) ** 2)
    assert jnp.allclose(loss, ref, rtol=1e-5, atol=1e-6), (loss, ref)

    print("KERNEL_OK")
</pallas_src>

<mosaic_0001>
module attributes {stable_mosaic.version = 11 : i64} {
  func.func @_linear_mse_kernel(%arg0: memref<8x8xf32, #tpu.memory_space<vmem>>, %arg1: memref<5x4xf32, #tpu.memory_space<vmem>>, %arg2: memref<1x1xf32, #tpu.memory_space<smem>>) attributes {dimension_semantics = [], scalar_prefetch = 0 : i64, scratch_operands = 0 : i64, tpu.core_type = #tpu.core_type<tc>} {
    %c0 = arith.constant 0 : index
    %c0_0 = arith.constant 0 : index
    %0 = vector.load %arg0[%c0, %c0_0] : memref<8x8xf32, #tpu.memory_space<vmem>>, vector<8x8xf32>
    %c0_1 = arith.constant 0 : index
    %c0_2 = arith.constant 0 : index
    %1 = vector.load %arg1[%c0_1, %c0_2] : memref<5x4xf32, #tpu.memory_space<vmem>>, vector<5x4xf32>
    %2 = vector.extract_strided_slice %0 {offsets = [0, 0], sizes = [8, 4], strides = [1, 1]} : vector<8x8xf32> to vector<8x4xf32>
    %3 = vector.extract_strided_slice %0 {offsets = [0, 4], sizes = [8, 4], strides = [1, 1]} : vector<8x8xf32> to vector<8x4xf32>
    %4 = vector.extract_strided_slice %1 {offsets = [4, 0], sizes = [1, 4], strides = [1, 1]} : vector<5x4xf32> to vector<1x4xf32>
    %5 = vector.shape_cast %4 : vector<1x4xf32> to vector<1x4xf32>
    %6 = vector.broadcast %5 : vector<1x4xf32> to vector<8x4xf32>
    %7 = vector.extract_strided_slice %2 {offsets = [0, 0], sizes = [8, 1], strides = [1, 1]} : vector<8x4xf32> to vector<8x1xf32>
    %8 = vector.extract_strided_slice %1 {offsets = [0, 0], sizes = [1, 4], strides = [1, 1]} : vector<5x4xf32> to vector<1x4xf32>
    %9 = vector.broadcast %7 : vector<8x1xf32> to vector<8x4xf32>
    %10 = vector.broadcast %8 : vector<1x4xf32> to vector<8x4xf32>
    %11 = arith.mulf %9, %10 : vector<8x4xf32>
    %12 = arith.addf %6, %11 : vector<8x4xf32>
    %13 = vector.extract_strided_slice %2 {offsets = [0, 1], sizes = [8, 1], strides = [1, 1]} : vector<8x4xf32> to vector<8x1xf32>
    %14 = vector.extract_strided_slice %1 {offsets = [1, 0], sizes = [1, 4], strides = [1, 1]} : vector<5x4xf32> to vector<1x4xf32>
    %15 = vector.broadcast %13 : vector<8x1xf32> to vector<8x4xf32>
    %16 = vector.broadcast %14 : vector<1x4xf32> to vector<8x4xf32>
    %17 = arith.mulf %15, %16 : vector<8x4xf32>
    %18 = arith.addf %12, %17 : vector<8x4xf32>
    %19 = vector.extract_strided_slice %2 {offsets = [0, 2], sizes = [8, 1], strides = [1, 1]} : vector<8x4xf32> to vector<8x1xf32>
    %20 = vector.extract_strided_slice %1 {offsets = [2, 0], sizes = [1, 4], strides = [1, 1]} : vector<5x4xf32> to vector<1x4xf32>
    %21 = vector.broadcast %19 : vector<8x1xf32> to vector<8x4xf32>
    %22 = vector.broadcast %20 : vector<1x4xf32> to vector<8x4xf32>
    %23 = arith.mulf %21, %22 : vector<8x4xf32>
    %24 = arith.addf %18, %23 : vector<8x4xf32>
    %25 = vector.extract_strided_slice %2 {offsets = [0, 3], sizes = [8, 1], strides = [1, 1]} : vector<8x4xf32> to vector<8x1xf32>
    %26 = vector.extract_strided_slice %1 {offsets = [3, 0], sizes = [1, 4], strides = [1, 1]} : vector<5x4xf32> to vector<1x4xf32>
    %27 = vector.broadcast %25 : vector<8x1xf32> to vector<8x4xf32>
    %28 = vector.broadcast %26 : vector<1x4xf32> to vector<8x4xf32>
    %29 = arith.mulf %27, %28 : vector<8x4xf32>
    %30 = arith.addf %24, %29 : vector<8x4xf32>
    %31 = arith.subf %30, %3 : vector<8x4xf32>
    %32 = arith.mulf %31, %31 : vector<8x4xf32>
    %33 = vector.shape_cast %32 : vector<8x4xf32> to vector<1x8x4xf32>
    %cst = arith.constant dense<0.000000e+00> : vector<1xf32>
    %34 = vector.multi_reduction <add>, %33, %cst [1, 2] : vector<1x8x4xf32> to vector<1xf32>
    %35 = vector.shape_cast %34 : vector<1xf32> to vector<1x1x1xf32>
    %36 = vector.extract %35[0, 0, 0] : f32 from vector<1x1x1xf32>
    %cst_3 = arith.constant 3.125000e-02 : f32
    %37 = arith.mulf %36, %cst_3 : f32
    %c0_4 = arith.constant 0 : index
    %c0_5 = arith.constant 0 : index
    %38 = memref.load %arg2[%c0_4, %c0_5] : memref<1x1xf32, #tpu.memory_space<smem>>
    memref.store %37, %arg2[%c0_4, %c0_5] : memref<1x1xf32, #tpu.memory_space<smem>>
    return
  }
}

</mosaic_0001>

<bundles_post_ra>
// kernel: linear_mse_loss.1
= control target key start
LH: loop header
LB: loop body
LE: loop exit
PB: predicated region body
PF: predicated region fallthrough
CT: control target
= control target key end

     0   :  { %v116_v1 = vmov 0   ;;  %v117_v2 = vmov 2   ;;  %s155_s0 = inlined_call_operand.vmem [shape: f32[8,8], index: 0, kind: input, shape index: {}]   ;;  %s156_s1 = inlined_call_operand.vmem [shape: f32[5,4], index: 1, kind: input, shape index: {}]   ;;  %s157_s2 = inlined_call_operand.hbm [shape: f32[1,1], index: 2, kind: output, shape index: {}]  }
   0x1   :  { %v12_v0 = vld [vmem:[%s155_s0] sm:$0xff]  ;;  %99 = vset.pattern.permute.xlu0 %v116_v1  ;;  %101 = vset.pattern.permute.xlu1 %v117_v2 }
   0x2   :  { %7 = vsyncpa [#allocation3], 0  ;;  %20 = vperm.xlu0 %99, %v12_v0   ;;  %40 = vperm.xlu1 %101, %v12_v0   ;;  %v118_v3 = vmov 1   ;;  %v119_v4 = vmov 3   ;;  %s120_s11 = smov 124   ;;  %v14_v5 = vlaneseq  ;;  %vm64_vm0 = vcmask 31744  }
   0x3   :  { %v13_v8 = vld [vmem:[%s156_s1] sm:$0x1f]  ;;  %s104_s16 = scalar_lea.hbm %s157_s2, 16 }
   0x4   :  { %v15_v6 = vshrl.u32 %v14_v5, 7  ;;  %p105_p0 = scmp.ne.s32.totalorder %s157_s2, %s104_s16  ;;  %p108_p1 = scmp.lt.u32.totalorder %s104_s16, %s157_s2 }
   0x6   :  { %100 = vset.pattern.permute.xlu0 %v118_v3  ;;  %102 = vset.pattern.permute.xlu1 %v119_v4  ;;  %v25_v7 = vsub.s32 0, %v15_v6  ;;  %v16_v9 = vsub.s32 4, %v15_v6  ;;  %v35_v11 = vsub.s32 1, %v15_v6  ;;  %v45_v13 = vsub.s32 2, %v15_v6  ;;  %p110_p2 = pnand %p108_p1, %p105_p0 }
   0x7   :  { %30 = vperm.xlu0 %100, %v12_v0   ;;  %50 = vperm.xlu1 %102, %v12_v0   ;;  %v55_v15 = vsub.s32 3, %v15_v6 }
   0x8   :  { %v26_v10 = vrot.slane %v13_v8, %v25_v7  ;;  %v17_v16 = vrot.slane %v13_v8, %v16_v9  ;;  %v36_v18 = vrot.slane %v13_v8, %v35_v11  ;;  %v46_v19 = vrot.slane %v13_v8, %v45_v13 }
   0x9   :  { %v56_v20 = vrot.slane %v13_v8, %v55_v15 }
   0xb   :  { %59 = vrot.lane.b32.xlu1 %v12_v0, %s120_s11  ;;  %103 = vset.pattern.permute.xlu0 %v119_v4 }
  0x81   :  { %v21_v12 = vpop.permute.xlu0 %20  ;;  %v41_v14 = vpop.permute.xlu1 %40 }
  0x82   :  { %v27_v17 = vmul.f32 %v26_v10, %v21_v12  ;;  %v47_v25 = vmul.f32 %v46_v19, %v41_v14 }
  0x84   :  { %v28_v23 = vadd.f32 %v27_v17, %v17_v16 }
  0x86   :  { %v31_v21 = vpop.permute.xlu0 %30  ;;  %v51_v22 = vpop.permute.xlu1 %50 }
  0x87   :  { %v37_v24 = vmul.f32 %v36_v18, %v31_v21  ;;  %v57_v27 = vmul.f32 %v56_v20, %v51_v22 }
  0x89   :  { %v38_v26 = vadd.f32 %v37_v24, %v28_v23 }
  0x8a   :  { %v60_v29 = vpop.permute.xlu1 %59 }
  0x8b   :  { %v48_v28 = vadd.f32 %v47_v25, %v38_v26 }
  0x8d   :  { %v58_v30 = vadd.f32 %v57_v27, %v48_v28 }
  0x8f   :  { %v62_v31 = vsub.f32 %v58_v30, %v60_v29 }
  0x91   :  { %v63_v32 = vmul.f32 %v62_v31, %v62_v31 }
  0x93   :  { %v65_v33 = vsel %vm64_vm0, %v63_v32, 0.0 }
  0x94   :  { %66 = vadd.xlane.f32.xlu0 %v65_v33 }
 0x121   :  { %v67_v34 = vpop.xlane.xlu0 %66 }
 0x122   :  { %v68_v35 = vrot.slane %v67_v34, 4 }
 0x124   :  { %v69_v36 = vadd.f32 %v68_v35, %v67_v34 }
 0x126   :  { %v70_v37 = vrot.slane %v69_v36, 2 }
 0x128   :  { %v71_v38 = vadd.f32 %v70_v37, %v69_v36 }
 0x12a   :  { %v72_v39 = vrot.slane %v71_v38, 1 }
 0x12c   :  { %v73_v40 = vadd.f32 %v72_v39, %v71_v38 }
 0x12e   :  { %91 = vpush %v73_v40 }
 0x15f   :  { %s92_s1 = spop %91 }
 0x160   :  { %s75_s13 = smul.f32 0.03125, %s92_s1 }
 0x162   :  { %77 = sst [smem:[#allocation2]] %s75_s13 }
 0x163   :  { %113 = shalt.err (!%p110_p2)
}
 0x164   :  { %s121_s21 = smov [#allocation2]  }
 0x165   :  { %85 = dma.smem_to_hbm %s121_s21, 16, %s157_s2, [#allocation3]  }
 0x166   :  { %114 = dma.done.wait [#allocation3], 16  }
 0x167   :  { %115 = vsyncadd [#allocation3], 4294967280 }
 0x168   :  { %89 = sfence }
 0x169   :  { %90 = vsyncpa [#allocation3], 1 }

</bundles_post_ra>
